<compile_context>
chip_gen: v7x
topology: tpu7x:2x2x1
jax: 0.10.0
libtpu: 0.0.40
codegen_flags: <defaults>
</compile_context>

<pallas_src>
import jax
import jax.numpy as jnp
from jax.experimental import pallas as pl
from jax.experimental.pallas import tpu as pltpu


def _round_up(v, m):
    return -(-v // m) * m


def _actor_critic_kernel(x_ref, w1_ref, b1_ref, wa_ref, ba_ref, wb_ref, bb_ref,
                         out_ref):
    x = x_ref[...]                                                  # (TB, D) f32

    # layer1: Linear(input_dim, 32) + ReLU (cols 32..127 of w1/b1 are zero).
    h1 = jnp.dot(x, w1_ref[...], preferred_element_type=jnp.float32) + b1_ref[...]
    h1 = jnp.maximum(h1, 0.0)

    # fused [layer2 | actor_sigma]:  c1 = [h2_pre(16) | sigma(A) | pad]
    c1 = jnp.dot(h1, wa_ref[...], preferred_element_type=jnp.float32) + ba_ref[...]

    # ReLU over the whole slab is safe: columns >= 16 (sigma / padding) only
    # ever multiply the zero rows of Wb, so they never reach the third matmul.
    h2 = jnp.maximum(c1, 0.0)

    # fused [actor_mu | critic]:  c2 = [mu(A) | critic(C) | pad]
    c2 = jnp.dot(h2, wb_ref[...], preferred_element_type=jnp.float32) + bb_ref[...]

    p1 = wa_ref.shape[1]                     # static, 128-lane aligned split
    out_ref[:, :p1] = c1.astype(out_ref.dtype)   # pre-ReLU -> sigma at cols 16:16+A
    out_ref[:, p1:] = c2.astype(out_ref.dtype)   # mu at cols :A, critic at A:A+C


def prepare_params(params):
    """One-time packing: fuse heads into lane-aligned f32 slabs.

    Only the output (N) dims are padded to 128 lanes; the contraction dims are
    left at their natural sizes (Mosaic handles K < 128 matmuls). Run once
    outside the per-step hot path."""
    input_dim = params["w1"].shape[0]
    A = params["w_mu"].shape[1]
    C = params["w_critic"].shape[1]
    H1p = _round_up(32, 128)                      # layer1 width padded to 128 lanes
    P1 = _round_up(16 + A, 128)                   # [h2_pre | sigma]
    P2 = _round_up(A + C, 128)                    # [mu | critic]

    w1 = jnp.zeros((input_dim, H1p), jnp.float32).at[:, :32].set(params["w1"])
    b1 = jnp.zeros((1, H1p), jnp.float32).at[0, :32].set(params["b1"])

    wa = (jnp.zeros((H1p, P1), jnp.float32)
          .at[:32, :16].set(params["w2"])
          .at[:32, 16:16 + A].set(params["w_sigma"]))
    ba = (jnp.zeros((1, P1), jnp.float32)
          .at[0, :16].set(params["b2"])
          .at[0, 16:16 + A].set(params["b_sigma"]))

    wb = (jnp.zeros((P1, P2), jnp.float32)        # rows >= 16 stay zero (ReLU trick)
          .at[:16, :A].set(params["w_mu"])
          .at[:16, A:A + C].set(params["w_critic"]))
    bb = (jnp.zeros((1, P2), jnp.float32)
          .at[0, :A].set(params["b_mu"])
          .at[0, A:A + C].set(params["b_critic"]))

    return dict(w1=w1, b1=b1, wa=wa, ba=ba, wb=wb, bb=bb)


@jax.jit
def actor_critic_forward(x, prepared):
    """Pallas forward. x: (B, input_dim) f32. Returns the (B, P1+P2) bf16 slab:
    cols 16:16+A = sigma, cols P1:P1+A = mu, cols P1+A:P1+A+C = critic.
    Consumers slice the heads (the slices fuse into the consumer's jit)."""
    B, D = x.shape
    w1, b1 = prepared["w1"], prepared["b1"]
    wa, ba = prepared["wa"], prepared["ba"]
    wb, bb = prepared["wb"], prepared["bb"]
    assert w1.shape[0] == D, "x feature dim must match prepared w1"
    H1p = w1.shape[1]
    P1, P2 = wa.shape[1], wb.shape[1]

    # Batch tiling: whole batch as one full-array block for small B (no wrapper
    # pad/cast HLO at all); 512-row tiles (multiple of 256 -> full MXU passes on
    # v6e/v7x) for big rollouts. Per-step VMEM (double-buffered x + out tiles
    # plus ~135 KB resident weights) is ~0.7 MB -> fits v7x 32 MiB scoped VMEM.
    if B <= 512:
        TB, Bp = B, B
        xp = x
    else:
        TB = 512
        Bp = _round_up(B, TB)
        xp = jnp.pad(x, ((0, Bp - B), (0, 0))) if Bp != B else x

    flops = 2 * Bp * (D * H1p + H1p * P1 + P1 * P2)
    bytes_accessed = (xp.size * 4
                      + (w1.size + wa.size + wb.size) * 4
                      + (b1.size + ba.size + bb.size) * 4
                      + Bp * (P1 + P2) * 2)

    const2 = lambda i: (0, 0)
    out = pl.pallas_call(
        _actor_critic_kernel,
        out_shape=jax.ShapeDtypeStruct((Bp, P1 + P2), jnp.bfloat16),
        grid=(Bp // TB,),
        in_specs=[
            pl.BlockSpec((TB, D), lambda i: (i, 0)),       # x: batch-tiled
            pl.BlockSpec(w1.shape, const2),                # weights/biases stay
            pl.BlockSpec(b1.shape, const2),                # VMEM-resident across
            pl.BlockSpec(wa.shape, const2),                # grid steps (constant
            pl.BlockSpec(ba.shape, const2),                # index_maps)
            pl.BlockSpec(wb.shape, const2),
            pl.BlockSpec(bb.shape, const2),
        ],
        out_specs=pl.BlockSpec((TB, P1 + P2), lambda i: (i, 0)),
        compiler_params=pltpu.CompilerParams(
            dimension_semantics=("parallel",)),            # megacore on v7x
        cost_estimate=pl.CostEstimate(flops=flops, transcendentals=0,
                                      bytes_accessed=bytes_accessed),
    )(xp, w1, b1, wa, ba, wb, bb)

    return out[:B] if Bp != B else out


def split_heads(slab, prepared, actor_shape, critic_shape):
    """Slice (mu, sigma, critic) out of the forward slab. In real training code
    this lives inside the consumer's jit so the slices fuse away."""
    P1 = prepared["wa"].shape[1]
    A, C = actor_shape, critic_shape
    sigma = slab[:, 16:16 + A].astype(jnp.float32)
    mu = slab[:, P1:P1 + A].astype(jnp.float32)
    critic = slab[:, P1 + A:P1 + A + C].astype(jnp.float32)
    return mu, sigma, critic


def init_params(key, input_dim, actor_shape, critic_shape):
    """Deterministic init mimicking torch.nn.Linear (uniform +-1/sqrt(fan_in)).
    Weights are stored as (in_features, out_features)."""
    def linear(k, fan_in, fan_out):
        kw, kb = jax.random.split(k)
        bound = 1.0 / jnp.sqrt(fan_in)
        w = jax.random.uniform(kw, (fan_in, fan_out), jnp.float32, -bound, bound)
        b = jax.random.uniform(kb, (fan_out,), jnp.float32, -bound, bound)
        return w, b

    ks = jax.random.split(key, 5)
    w1, b1 = linear(ks[0], input_dim, 32)
    w2, b2 = linear(ks[1], 32, 16)
    w_mu, b_mu = linear(ks[2], 16, actor_shape)
    w_sigma, b_sigma = linear(ks[3], 32, actor_shape)   # declared: Linear(32, actor_shape)
    w_critic, b_critic = linear(ks[4], 16, critic_shape)
    return dict(w1=w1, b1=b1, w2=w2, b2=b2,
                w_mu=w_mu, b_mu=b_mu, w_sigma=w_sigma, b_sigma=b_sigma,
                w_critic=w_critic, b_critic=b_critic)


def reference_forward(x, params):
    """Pure-JAX f32 reference for validation."""
    h1 = jax.nn.relu(x @ params["w1"] + params["b1"])
    h2 = jax.nn.relu(h1 @ params["w2"] + params["b2"])
    mu = h2 @ params["w_mu"] + params["b_mu"]
    sigma = h1 @ params["w_sigma"] + params["b_sigma"]
    critic = h2 @ params["w_critic"] + params["b_critic"]
    return mu, sigma, critic


if __name__ == "__main__":
    key = jax.random.PRNGKey(0)
    k_param, k_x, k_x2 = jax.random.split(key, 3)

    batch = 2
    input_dim = 8       # input_shape = (8,)
    actor_shape = 4
    critic_shape = 1

    params = init_params(k_param, input_dim, actor_shape, critic_shape)
    prepared = prepare_params(params)

    # --- small demo batch (single full-array block, no wrapper pad/cast) ---
    x = jax.random.normal(k_x, (batch, input_dim), jnp.float32)
    slab = actor_critic_forward(x, prepared)
    jax.block_until_ready(slab)
    mu, sigma, critic = split_heads(slab, prepared, actor_shape, critic_shape)

    mu_r, sigma_r, critic_r = reference_forward(x, params)
    assert mu.shape == (batch, actor_shape)
    assert sigma.shape == (batch, actor_shape)
    assert critic.shape == (batch, critic_shape)
    # f32 compute inside the kernel; only the final output store is bf16.
    assert jnp.allclose(mu, mu_r, atol=2e-2, rtol=2e-2)
    assert jnp.allclose(sigma, sigma_r, atol=2e-2, rtol=2e-2)
    assert jnp.allclose(critic, critic_r, atol=2e-2, rtol=2e-2)

    # --- larger rollout batch exercising the batch grid (parallel on v7x) ---
    x2 = jax.random.normal(k_x2, (1024, input_dim), jnp.float32)
    slab2 = actor_critic_forward(x2, prepared)
    jax.block_until_ready(slab2)
    mu2, sigma2, critic2 = split_heads(slab2, prepared, actor_shape, critic_shape)
    mu2_r, sigma2_r, critic2_r = reference_forward(x2, params)
    assert jnp.allclose(mu2, mu2_r, atol=2e-2, rtol=2e-2)
    assert jnp.allclose(sigma2, sigma2_r, atol=2e-2, rtol=2e-2)
    assert jnp.allclose(critic2, critic2_r, atol=2e-2, rtol=2e-2)

    print("KERNEL_OK")
</pallas_src>

<mosaic_0001>
module attributes {stable_mosaic.version = 11 : i64} {
  func.func @_actor_critic_kernel(%arg0: i32, %arg1: memref<2x8xf32, #tpu.memory_space<vmem>>, %arg2: memref<8x128xf32, #tpu.memory_space<vmem>>, %arg3: memref<1x128xf32, #tpu.memory_space<vmem>>, %arg4: memref<128x128xf32, #tpu.memory_space<vmem>>, %arg5: memref<1x128xf32, #tpu.memory_space<vmem>>, %arg6: memref<128x128xf32, #tpu.memory_space<vmem>>, %arg7: memref<1x128xf32, #tpu.memory_space<vmem>>, %arg8: memref<2x256xbf16, #tpu.memory_space<vmem>>) attributes {dimension_semantics = [#tpu.dimension_semantics<parallel>], iteration_bounds = array<i64: 1>, scalar_prefetch = 0 : i64, scratch_operands = 0 : i64, tpu.core_type = #tpu.core_type<tc>, window_params = [{transform_indices = @transform_0, window_bounds = array<i64: 2, 8>}, {pipeline_mode = #tpu.pipeline_mode<synchronous>, transform_indices = @transform_1, window_bounds = array<i64: 8, 128>}, {pipeline_mode = #tpu.pipeline_mode<synchronous>, transform_indices = @transform_2, window_bounds = array<i64: 1, 128>}, {pipeline_mode = #tpu.pipeline_mode<synchronous>, transform_indices = @transform_3, window_bounds = array<i64: 128, 128>}, {pipeline_mode = #tpu.pipeline_mode<synchronous>, transform_indices = @transform_4, window_bounds = array<i64: 1, 128>}, {pipeline_mode = #tpu.pipeline_mode<synchronous>, transform_indices = @transform_5, window_bounds = array<i64: 128, 128>}, {pipeline_mode = #tpu.pipeline_mode<synchronous>, transform_indices = @transform_6, window_bounds = array<i64: 1, 128>}, {transform_indices = @transform_7, window_bounds = array<i64: 2, 256>}]} {
    %c0 = arith.constant 0 : index
    %c0_0 = arith.constant 0 : index
    %0 = vector.load %arg1[%c0, %c0_0] : memref<2x8xf32, #tpu.memory_space<vmem>>, vector<2x8xf32>
    %c0_1 = arith.constant 0 : index
    %c0_2 = arith.constant 0 : index
    %1 = vector.load %arg2[%c0_1, %c0_2] : memref<8x128xf32, #tpu.memory_space<vmem>>, vector<8x128xf32>
    %cst = arith.constant dense<0.000000e+00> : vector<2x128xf32>
    %2 = tpu.matmul %0, %1, %cst {dimension_numbers = #tpu.dot_dimension_numbers<[1], [0], [0], [1], [0, 0, 1, 1], [], []>} : vector<2x8xf32>, vector<8x128xf32>, vector<2x128xf32> -> vector<2x128xf32>
    %c0_3 = arith.constant 0 : index
    %c0_4 = arith.constant 0 : index
    %3 = vector.load %arg3[%c0_3, %c0_4] : memref<1x128xf32, #tpu.memory_space<vmem>>, vector<1x128xf32>
    %4 = vector.broadcast %3 : vector<1x128xf32> to vector<2x128xf32>
    %5 = arith.addf %2, %4 : vector<2x128xf32>
    %cst_5 = arith.constant 0.000000e+00 : f32
    %6 = vector.broadcast %cst_5 : f32 to vector<2x128xf32>
    %7 = arith.maximumf %5, %6 : vector<2x128xf32>
    %c0_6 = arith.constant 0 : index
    %c0_7 = arith.constant 0 : index
    %8 = vector.load %arg4[%c0_6, %c0_7] : memref<128x128xf32, #tpu.memory_space<vmem>>, vector<128x128xf32>
    %cst_8 = arith.constant dense<0.000000e+00> : vector<2x128xf32>
    %9 = tpu.matmul %7, %8, %cst_8 {dimension_numbers = #tpu.dot_dimension_numbers<[1], [0], [0], [1], [0, 0, 1, 1], [], []>} : vector<2x128xf32>, vector<128x128xf32>, vector<2x128xf32> -> vector<2x128xf32>
    %c0_9 = arith.constant 0 : index
    %c0_10 = arith.constant 0 : index
    %10 = vector.load %arg5[%c0_9, %c0_10] : memref<1x128xf32, #tpu.memory_space<vmem>>, vector<1x128xf32>
    %11 = vector.broadcast %10 : vector<1x128xf32> to vector<2x128xf32>
    %12 = arith.addf %9, %11 : vector<2x128xf32>
    %cst_11 = arith.constant 0.000000e+00 : f32
    %13 = vector.broadcast %cst_11 : f32 to vector<2x128xf32>
    %14 = arith.maximumf %12, %13 : vector<2x128xf32>
    %c0_12 = arith.constant 0 : index
    %c0_13 = arith.constant 0 : index
    %15 = vector.load %arg6[%c0_12, %c0_13] : memref<128x128xf32, #tpu.memory_space<vmem>>, vector<128x128xf32>
    %cst_14 = arith.constant dense<0.000000e+00> : vector<2x128xf32>
    %16 = tpu.matmul %14, %15, %cst_14 {dimension_numbers = #tpu.dot_dimension_numbers<[1], [0], [0], [1], [0, 0, 1, 1], [], []>} : vector<2x128xf32>, vector<128x128xf32>, vector<2x128xf32> -> vector<2x128xf32>
    %c0_15 = arith.constant 0 : index
    %c0_16 = arith.constant 0 : index
    %17 = vector.load %arg7[%c0_15, %c0_16] : memref<1x128xf32, #tpu.memory_space<vmem>>, vector<1x128xf32>
    %18 = vector.broadcast %17 : vector<1x128xf32> to vector<2x128xf32>
    %19 = arith.addf %16, %18 : vector<2x128xf32>
    %20 = arith.truncf %12 : vector<2x128xf32> to vector<2x128xbf16>
    %c0_17 = arith.constant 0 : index
    %c0_18 = arith.constant 0 : index
    %21 = vector.load %arg8[%c0_17, %c0_18] : memref<2x256xbf16, #tpu.memory_space<vmem>>, vector<2x128xbf16>
    tpu.vector_store %arg8[%c0_17, %c0_18], %20 {strides = array<i32>} : memref<2x256xbf16, #tpu.memory_space<vmem>>, vector<2x128xbf16>,
    %22 = arith.truncf %19 : vector<2x128xf32> to vector<2x128xbf16>
    %c0_19 = arith.constant 0 : index
    %c128 = arith.constant 128 : index
    %23 = vector.load %arg8[%c0_19, %c128] : memref<2x256xbf16, #tpu.memory_space<vmem>>, vector<2x128xbf16>
    tpu.vector_store %arg8[%c0_19, %c128], %22 {strides = array<i32>} : memref<2x256xbf16, #tpu.memory_space<vmem>>, vector<2x128xbf16>,
    return
  }
  func.func @transform_0(%arg0: i32) -> (i32, i32) {
    %c0_i32 = arith.constant 0 : i32
    %c0_i32_0 = arith.constant 0 : i32
    return %arg0, %c0_i32 : i32, i32
  }
  func.func @transform_1(%arg0: i32) -> (i32, i32) {
    %c0_i32 = arith.constant 0 : i32
    %c0_i32_0 = arith.constant 0 : i32
    %c0_i32_1 = arith.constant 0 : i32
    return %c0_i32, %c0_i32_0 : i32, i32
  }
  func.func @transform_2(%arg0: i32) -> (i32, i32) {
    %c0_i32 = arith.constant 0 : i32
    %c0_i32_0 = arith.constant 0 : i32
    %c0_i32_1 = arith.constant 0 : i32
    return %c0_i32, %c0_i32_0 : i32, i32
  }
  func.func @transform_3(%arg0: i32) -> (i32, i32) {
    %c0_i32 = arith.constant 0 : i32
    %c0_i32_0 = arith.constant 0 : i32
    %c0_i32_1 = arith.constant 0 : i32
    return %c0_i32, %c0_i32_0 : i32, i32
  }
  func.func @transform_4(%arg0: i32) -> (i32, i32) {
    %c0_i32 = arith.constant 0 : i32
    %c0_i32_0 = arith.constant 0 : i32
    %c0_i32_1 = arith.constant 0 : i32
    return %c0_i32, %c0_i32_0 : i32, i32
  }
  func.func @transform_5(%arg0: i32) -> (i32, i32) {
    %c0_i32 = arith.constant 0 : i32
    %c0_i32_0 = arith.constant 0 : i32
    %c0_i32_1 = arith.constant 0 : i32
    return %c0_i32, %c0_i32_0 : i32, i32
  }
  func.func @transform_6(%arg0: i32) -> (i32, i32) {
    %c0_i32 = arith.constant 0 : i32
    %c0_i32_0 = arith.constant 0 : i32
    %c0_i32_1 = arith.constant 0 : i32
    return %c0_i32, %c0_i32_0 : i32, i32
  }
  func.func @transform_7(%arg0: i32) -> (i32, i32) {
    %c0_i32 = arith.constant 0 : i32
    %c0_i32_0 = arith.constant 0 : i32
    return %arg0, %c0_i32 : i32, i32
  }
}

</mosaic_0001>

<bundles_post_ra>
// kernel: actor_critic_forward.1
= control target key start
LH: loop header
LB: loop body
LE: loop exit
PB: predicated region body
PF: predicated region fallthrough
CT: control target
= control target key end

     0   :  { %12 = vsyncpa [#allocation3], 0  ;;  %s757_s0 = inlined_call_operand.hbm [shape: f32[2,8], index: 0, kind: input, shape index: {}]   ;;  %s758_s1 = inlined_call_operand.vmem [shape: f32[8,128], index: 1, kind: input, shape index: {}]   ;;  %s759_s2 = inlined_call_operand.vmem [shape: f32[1,128], index: 2, kind: input, shape index: {}]   ;;  %s760_s3 = inlined_call_operand.hbm [shape: f32[128,128], index: 3, kind: input, shape index: {}]   ;;  %s761_s4 = inlined_call_operand.vmem [shape: f32[1,128], index: 4, kind: input, shape index: {}]   ;;  %s762_s5 = inlined_call_operand.hbm [shape: f32[128,128], index: 5, kind: input, shape index: {}]   ;;  %s763_s6 = inlined_call_operand.vmem [shape: f32[1,128], index: 6, kind: input, shape index: {}]   ;;  %s764_s7 = inlined_call_operand.hbm [shape: bf16[2,256], index: 7, kind: output, shape index: {}]  }
   0x1   :  { %13 = vsyncpa [#allocation6], 0 }
   0x2   :  { %14 = vsyncpa [#allocation4], 0  ;;  %s623_s24 = smov [#allocation5]   ;;  %s529_s28 = scalar_lea.hbm %s760_s3, 2048 }
   0x3   :  { %s34_s25 = sshll.u32 %s623_s24, 4  ;;  %p530_p0 = scmp.ne.s32.totalorder %s760_s3, %s529_s28  ;;  %s35_s25 = int_to_ptr.vmem [resolvable:$true] %s34_s25 }
   0x4   :  { %p533_p1 = scmp.lt.u32.totalorder %s529_s28, %s760_s3 }
   0x6   :  { %p535_p2 = pnand %p533_p1, %p530_p0 }
   0x8   :  { %538 = shalt.err (!%p535_p2)
}
   0x9   :  { %s539_s10 = scalar_lea.vmem %s35_s25, 2048  ;;  %p544_p4 = scmp.lt.s32.totalorder %s35_s25, %s35_s25 }
   0xa   :  { %p540_p3 = scmp.ne.s32.totalorder %s35_s25, %s539_s10  ;;  %p545_p5 = scmp.lt.s32.totalorder %s539_s10, %s539_s10 }
   0xc   :  { %p546_p6 = por %p545_p5, %p544_p4 }
   0xe   :  { %p547_p7 = pnand %p546_p6, %p540_p3 }
  0x10   :  { %550 = shalt.err (!%p547_p7)
}
  0x11   :  { %s624_s11 = smov 128   ;;  %s625_s12 = smov 8  }
  0x12   :  { %40 = dma.hbm_to_vmem [thread:$0]  %s760_s3, 2048, %s35_s25, [#allocation6], %s624_s11, %s624_s11, %s625_s12  }
  0x13   :  { %s626_s15 = smov [#allocation2]   ;;  %s627_s17 = smov [#allocation7]  }
  0x14   :  { %s21_s16 = sshll.u32 %s626_s15, 4  ;;  %s48_s18 = sshll.u32 %s627_s17, 4  ;;  %s22_s16 = int_to_ptr.vmem [resolvable:$true] %s21_s16  ;;  %s49_s18 = int_to_ptr.vmem [resolvable:$true] %s48_s18 }
  0x15   :  { %s551_s21 = scalar_lea.hbm %s757_s0, 32 }
  0x16   :  { %p552_p8 = scmp.ne.s32.totalorder %s757_s0, %s551_s21  ;;  %p555_p9 = scmp.lt.u32.totalorder %s551_s21, %s757_s0 }
  0x18   :  { %p557_p10 = pnand %p555_p9, %p552_p8 }
  0x1a   :  { %560 = shalt.err (!%p557_p10)
}
  0x1b   :  { %s561_s3 = scalar_lea.vmem %s22_s16, 32  ;;  %p566_p12 = scmp.lt.s32.totalorder %s22_s16, %s22_s16 }
  0x1c   :  { %p562_p11 = scmp.ne.s32.totalorder %s22_s16, %s561_s3  ;;  %p567_p13 = scmp.lt.s32.totalorder %s561_s3, %s561_s3 }
  0x1e   :  { %p568_p0 = por %p567_p13, %p566_p12 }
  0x20   :  { %p569_p1 = pnand %p568_p0, %p562_p11 }
  0x22   :  { %572 = shalt.err (!%p569_p1)
}
  0x23   :  { %24 = dma.hbm_to_vmem [thread:$0]  %s757_s0, 32, %s22_s16, [#allocation3]  }
  0x24   :  { %s573_s30 = scalar_lea.hbm %s762_s5, 2048 }
  0x25   :  { %p574_p2 = scmp.ne.s32.totalorder %s762_s5, %s573_s30  ;;  %p577_p3 = scmp.lt.u32.totalorder %s573_s30, %s762_s5 }
  0x27   :  { %p579_p4 = pnand %p577_p3, %p574_p2 }
  0x29   :  { %582 = shalt.err (!%p579_p4)
}
  0x2a   :  { %s583_s14 = scalar_lea.vmem %s49_s18, 2048  ;;  %p588_p6 = scmp.lt.s32.totalorder %s49_s18, %s49_s18 }
  0x2b   :  { %p584_p5 = scmp.ne.s32.totalorder %s49_s18, %s583_s14  ;;  %p589_p7 = scmp.lt.s32.totalorder %s583_s14, %s583_s14 }
  0x2d   :  { %p590_p8 = por %p589_p7, %p588_p6 }
  0x2f   :  { %p591_p9 = pnand %p590_p8, %p584_p5 }
  0x31   :  { %594 = shalt.err (!%p591_p9)
}
  0x32   :  { %54 = dma.hbm_to_vmem [thread:$0]  %s762_s5, 2048, %s49_s18, [#allocation6], %s624_s11, %s624_s11, %s625_s12  }
  0x33   :  { %617 = dma.done.wait [#allocation3], 32  }
  0x34   :  { %618 = vsyncadd [#allocation3], 4294967264 }
  0x35   :  { %619 = dma.done.wait [#allocation6], 4096  }
  0x36   :  { %620 = vsyncadd [#allocation6], 4294963200  ;;  %v628_v0 = vmov 0.0   ;;  %vm629_vm0 = vmmov 0   ;;  %v630_v1 = vmov 0.0|0.0   ;;  %vm75_vm1 = vcmask 64512  }
  0x37   :  { %397 = vmatprep.subr.mxu0 %v628_v0  ;;  %399 = vmatprep.mubr.msk.f32.mxu0 %vm629_vm0, %v628_v0  ;;  %v67_v2 = vld [vmem:[%s758_s1] sm:$0xff]  ;;  %v66_v3 = vld [vmem:[#allocation2] sm:$0x3]  ;;  %v150_v4 = vld [vmem:[#allocation5] sm:$0xff]  ;;  %s631_s19 = smov [#allocation8]  }
  0x38   :  { %472 = vmatprep.subr.bf16.mxu1 %v630_v1  ;;  %434 = vmatprep.mubr.msk.f32.mxu1 %vm629_vm0, %v628_v0  ;;  %v151_v5 = vld [vmem:[#allocation5 + $0x8] sm:$0xff]  ;;  %v152_v6 = vld [vmem:[#allocation5 + $0x10] sm:$0xff]  ;;  %v153_v7 = vld [vmem:[#allocation5 + $0x18] sm:$0xff]  ;;  %s347_s20 = sshll.u32 %s631_s19, 4  ;;  %s348_s20 = int_to_ptr.vmem [resolvable:$true] %s347_s20 }
  0x39   :  { %398 = vmatpush3.msra.mxu0 %v67_v2  ;;  %v473_v8 = vpack.c.bf16 %v151_v5, %v150_v4  ;;  %v476_v9 = vpack.c.bf16 %v153_v7, %v152_v6  ;;  %v154_v10 = vld [vmem:[#allocation5 + $0x20] sm:$0xff]  ;;  %v155_v11 = vld [vmem:[#allocation5 + $0x28] sm:$0xff]  ;;  %v156_v13 = vld [vmem:[#allocation5 + $0x30] sm:$0xff]  ;;  %p600_p11 = scmp.lt.s32.totalorder %s348_s20, %s348_s20 }
  0x3a   :  { %400 = vmatmul.mubr.msk.f32.vlgmr.msra.gmra.mrb[0].mxu0 %vm75_vm1, %v66_v3  ;;  %496 = vmatprep.subr.bf16.mxu0 %v630_v1  ;;  %v479_v12 = vpack.c.bf16 %v155_v11, %v154_v10  ;;  %v157_v14 = vld [vmem:[#allocation5 + $0x38] sm:$0xff]  ;;  %v158_v16 = vld [vmem:[#allocation5 + $0x40] sm:$0xff]  ;;  %v159_v17 = vld [vmem:[#allocation5 + $0x48] sm:$0xff] }
  0x3b   :  { %469 = vmatprep.mubr.msk.f32.mxu0 %vm629_vm0, %v628_v0  ;;  %474 = vmatpush3.bf16.msra.mxu1 %v473_v8  ;;  %v482_v15 = vpack.c.bf16 %v157_v14, %v156_v13  ;;  %v485_v18 = vpack.c.bf16 %v159_v17, %v158_v16  ;;  %v160_v19 = vld [vmem:[#allocation5 + $0x50] sm:$0xff]  ;;  %v161_v20 = vld [vmem:[#allocation5 + $0x58] sm:$0xff]  ;;  %v162_v22 = vld [vmem:[#allocation5 + $0x60] sm:$0xff] }
  0x3c   :  { %475 = vmatprep.subr.bf16.mxu1 %v630_v1  ;;  %v488_v21 = vpack.c.bf16 %v161_v20, %v160_v19  ;;  %v163_v23 = vld [vmem:[#allocation5 + $0x68] sm:$0xff]  ;;  %v164_v25 = vld [vmem:[#allocation5 + $0x70] sm:$0xff]  ;;  %v165_v26 = vld [vmem:[#allocation5 + $0x78] sm:$0xff] }
  0x3d   :  { %v491_v24 = vpack.c.bf16 %v163_v23, %v162_v22  ;;  %v494_v27 = vpack.c.bf16 %v165_v26, %v164_v25  ;;  %v244_v28 = vld [vmem:[#allocation7] sm:$0xff]  ;;  %v245_v29 = vld [vmem:[#allocation7 + $0x8] sm:$0xff]  ;;  %v246_v30 = vld [vmem:[#allocation7 + $0x10] sm:$0xff] }
  0x3e   :  { %v497_v31 = vpack.c.bf16 %v245_v29, %v244_v28  ;;  %v247_v32 = vld [vmem:[#allocation7 + $0x18] sm:$0xff]  ;;  %v248_v34 = vld [vmem:[#allocation7 + $0x20] sm:$0xff]  ;;  %v249_v35 = vld [vmem:[#allocation7 + $0x28] sm:$0xff] }
  0x3f   :  { %477 = vmatpush3.bf16.msra.mxu1 %v476_v9  ;;  %v500_v33 = vpack.c.bf16 %v247_v32, %v246_v30  ;;  %v503_v36 = vpack.c.bf16 %v249_v35, %v248_v34  ;;  %v250_v37 = vld [vmem:[#allocation7 + $0x30] sm:$0xff]  ;;  %v251_v38 = vld [vmem:[#allocation7 + $0x38] sm:$0xff]  ;;  %v252_v40 = vld [vmem:[#allocation7 + $0x40] sm:$0xff] }
  0x40   :  { %478 = vmatprep.subr.bf16.mxu1 %v630_v1  ;;  %498 = vmatpush3.bf16.msra.mxu0 %v497_v31  ;;  %v506_v39 = vpack.c.bf16 %v251_v38, %v250_v37  ;;  %v253_v41 = vld [vmem:[#allocation7 + $0x48] sm:$0xff]  ;;  %v254_v43 = vld [vmem:[#allocation7 + $0x50] sm:$0xff]  ;;  %v255_v44 = vld [vmem:[#allocation7 + $0x58] sm:$0xff] }
  0x41   :  { %499 = vmatprep.subr.bf16.mxu0 %v630_v1  ;;  %v509_v42 = vpack.c.bf16 %v253_v41, %v252_v40  ;;  %v512_v45 = vpack.c.bf16 %v255_v44, %v254_v43  ;;  %v256_v46 = vld [vmem:[#allocation7 + $0x60] sm:$0xff]  ;;  %v257_v47 = vld [vmem:[#allocation7 + $0x68] sm:$0xff]  ;;  %v357_v49 = vld [vmem:[%s759_s2] ss:$0 sm:$0xff] }
  0x42   :  { %v515_v48 = vpack.c.bf16 %v257_v47, %v256_v46  ;;  %v258_v54 = vld [vmem:[#allocation7 + $0x70] sm:$0xff]  ;;  %v259_v55 = vld [vmem:[#allocation7 + $0x78] sm:$0xff] }
  0x43   :  { %480 = vmatpush3.bf16.msra.mxu1 %v479_v12  ;;  %v518_v56 = vpack.c.bf16 %v259_v55, %v258_v54  ;;  %v359_v57 = vld [vmem:[%s761_s4] ss:$0 sm:$0xff]  ;;  %s595_s4 = scalar_lea.vmem %s348_s20, 32 }
  0x44   :  { %481 = vmatprep.subr.bf16.mxu1 %v630_v1  ;;  %501 = vmatpush3.bf16.msra.mxu0 %v500_v33  ;;  %v360_v63 = vld [vmem:[%s763_s6] ss:$0 sm:$0xff]  ;;  %p596_p10 = scmp.ne.s32.totalorder %s348_s20, %s595_s4  ;;  %p601_p12 = scmp.lt.s32.totalorder %s595_s4, %s595_s4 }
  0x45   :  { %502 = vmatprep.subr.bf16.mxu0 %v630_v1 }
  0x46   :  { %p602_p13 = por %p601_p12, %p600_p11 }
  0x47   :  { %483 = vmatpush3.bf16.msra.mxu1 %v482_v15 }
  0x48   :  { %484 = vmatprep.subr.bf16.mxu1 %v630_v1  ;;  %504 = vmatpush3.bf16.msra.mxu0 %v503_v36  ;;  %p603_p0 = pnand %p602_p13, %p596_p10 }
  0x49   :  { %505 = vmatprep.subr.bf16.mxu0 %v630_v1 }
  0x4b   :  { %486 = vmatpush3.bf16.msra.mxu1 %v485_v18 }
  0x4c   :  { %487 = vmatprep.subr.bf16.mxu1 %v630_v1  ;;  %507 = vmatpush3.bf16.msra.mxu0 %v506_v39 }
  0x4d   :  { %508 = vmatprep.subr.bf16.mxu0 %v630_v1 }
  0x4f   :  { %489 = vmatpush3.bf16.msra.mxu1 %v488_v21 }
  0x50   :  { %490 = vmatprep.subr.bf16.mxu1 %v630_v1  ;;  %510 = vmatpush3.bf16.msra.mxu0 %v509_v42 }
  0x51   :  { %511 = vmatprep.subr.bf16.mxu0 %v630_v1 }
  0x53   :  { %492 = vmatpush3.bf16.msra.mxu1 %v491_v24 }
  0x54   :  { %493 = vmatprep.subr.bf16.mxu1 %v630_v1  ;;  %513 = vmatpush3.bf16.msra.mxu0 %v512_v45 }
  0x55   :  { %514 = vmatprep.subr.bf16.mxu0 %v630_v1 }
  0x57   :  { %495 = vmatpush3.bf16.msra.mxu1 %v494_v27 }
  0x58   :  { %516 = vmatpush3.bf16.msra.mxu0 %v515_v48 }
  0x59   :  { %517 = vmatprep.subr.bf16.mxu0 %v630_v1 }
  0x5c   :  { %519 = vmatpush3.bf16.msra.mxu0 %v518_v56 }
 0x10d   :  { %v145_v50 = vpop.f32.mrb[0].mxu0 }
 0x10e   :  { %v146_v51 = vadd.f32 %v357_v49, %v145_v50  ;;  %v401_v52 = vpop.f32.mrb[1].mxu0 }
 0x110   :  { %v149_v53 = vmax.f32 %v146_v51, 0.0 }
 0x112   :  { %435 = vmatmul.mubr.f32.vlgmr.msra.gmra.mrb[0].mxu1 %v149_v53 }
 0x1e5   :  { %v239_v58 = vpop.f32.mrb[0].mxu1 }
 0x1e6   :  { %v240_v59 = vadd.f32 %v359_v57, %v239_v58  ;;  %v436_v60 = vpop.f32.mrb[1].mxu1 }
 0x1e8   :  { %v243_v61 = vmax.f32 %v240_v59, 0.0  ;;  %v337_v62 = vpack.c.bf16 %v240_v59, %v240_v59 }
 0x1ea   :  { %338 = vst [vmem:[#allocation8] sm:$0x1] %v337_v62  ;;  %470 = vmatmul.mubr.f32.vlgmr.msra.gmra.mrb[2].mxu0 %v243_v61 }
 0x2bd   :  { %v333_v0 = vpop.f32.mrb[2].mxu0 }
 0x2be   :  { %v334_v1 = vadd.f32 %v360_v63, %v333_v0  ;;  %v471_v2 = vpop.f32.mrb[3].mxu0 }
 0x2c0   :  { %v339_v3 = vpack.c.bf16 %v334_v1, %v334_v1 }
 0x2c2   :  { %340 = vst [vmem:[#allocation8 + $0x1] sm:$0x1] %v339_v3 }
 0x2c3   :  { %606 = shalt.err (!%p603_p0)
}
 0x2c4   :  { %s607_s23 = scalar_lea.hbm %s764_s7, 32 }
 0x2c5   :  { %p608_p1 = scmp.ne.s32.totalorder %s764_s7, %s607_s23  ;;  %p611_p2 = scmp.lt.u32.totalorder %s607_s23, %s764_s7 }
 0x2c7   :  { %p613_p3 = pnand %p611_p2, %p608_p1 }
 0x2c9   :  { %616 = shalt.err (!%p613_p3)
}
 0x2ca   :  { %350 = dma.vmem_to_hbm [thread:$0]  %s348_s20, 32, %s764_s7, [#allocation4]  }
 0x2cb   :  { %621 = dma.done.wait [#allocation4], 32  }
 0x2cc   :  { %622 = vsyncadd [#allocation4], 4294967264 }
 0x2cd   :  { %354 = vsyncpa [#allocation3], 1 }
 0x2ce   :  { %355 = vsyncpa [#allocation6], 1 }
 0x2cf   :  { %356 = vsyncpa [#allocation4], 1 }

</bundles_post_ra>
